<compile_context>
chip_gen: v6e
topology: v6e:2x2x1
jax: 0.10.0
libtpu: 0.0.40
codegen_flags: <defaults>
</compile_context>

<pallas_src>
import jax
import jax.numpy as jnp
from jax.experimental import pallas as pl
from jax.experimental.pallas import tpu as pltpu


# --------------------------------------------------------------------------
# Kernel
# --------------------------------------------------------------------------
def _skipgram_loss_kernel(x_ref, t_ref, m_ref, o_ref, num_acc, den_acc):
    k = pl.program_id(1)  # reduction axis over L (trailing grid axis)

    @pl.when(k == 0)
    def _init():
        num_acc[...] = jnp.zeros_like(num_acc)
        den_acc[...] = jnp.zeros_like(den_acc)

    x = x_ref[...].astype(jnp.float32)   # logits   (TB, TL)
    t = t_ref[...].astype(jnp.float32)   # targets  (TB, TL)
    m = m_ref[...].astype(jnp.float32)   # mask     (TB, TL)

    # Numerically-stable BCE-with-logits (matches torch):
    #   l = max(x, 0) - x*t + log(1 + exp(-|x|))
    bce = jnp.maximum(x, 0.0) - x * t + jnp.log1p(jnp.exp(-jnp.abs(x)))
    w = bce * m

    # Lane-dense partial sums: fold TL into 128-lane chunks with plain VPU adds
    # (aligned static slices -> no XLU work in the inner loop). TL is always a
    # multiple of 128 (the wrapper pads L).
    tl = x.shape[1]
    nchunks = tl // 128
    num_p = w[:, 0:128]
    den_p = m[:, 0:128]
    for j in range(1, nchunks):
        sl = slice(j * 128, (j + 1) * 128)
        num_p = num_p + w[:, sl]
        den_p = den_p + m[:, sl]
    num_acc[...] += num_p               # (TB, 128)
    den_acc[...] += den_p               # (TB, 128)

    @pl.when(k == pl.num_programs(1) - 1)
    def _finalize():
        # mean(dim=1) * L / mask.sum(dim=1)  ==  num / den
        num = jnp.sum(num_acc[...], axis=1, keepdims=True)   # single XLU reduce
        den = jnp.sum(den_acc[...], axis=1, keepdims=True)
        # Exact divide: rows with mask.sum == 0 give inf/nan, same as PyTorch.
        o_ref[...] = num / den


# --------------------------------------------------------------------------
# Tiling / padding choices
# --------------------------------------------------------------------------
def _round_up(x, m):
    return ((x + m - 1) // m) * m


def _choose_tiles(B, L, max_itemsize, budget_bytes=4 << 20):
    """Pick (TB, TL, Bp, Lp): (8,128)-legal tiles and padded array dims.

    budget_bytes is the per-input-block VMEM budget (~4 MiB: good for v6e/v7x,
    still fine on v5e because the wrapper raises vmem_limit_bytes explicitly).
    """
    # ---- L tile: multiple of 128; pad L up to a multiple of 128 first. ----
    Lp = _round_up(L, 128)
    if Lp <= 2048:
        tl = Lp
    else:
        tl = 128                                   # always divides Lp
        for cand in range(2048, 127, -128):        # largest 128-mult divisor
            if Lp % cand == 0:
                tl = cand
                break

    # ---- B tile: pad B to a multiple of 8, pick a divisor of Bp. ----
    Bp = _round_up(B, 8)
    budget_rows = max(8, budget_bytes // (tl * max_itemsize))
    cap = min(budget_rows, Bp)
    if Bp >= 16:
        # v7x megacore: keep >= 2 batch grid steps so both TCs get work.
        cap = min(cap, max(8, (Bp // 2) // 8 * 8))
    cap = max(8, (cap // 8) * 8)

    tb = 8
    # Prefer a multiple-of-32 tile (native sublane tiling for int8/bf16 blocks)
    for cand in range((cap // 32) * 32, 31, -32):
        if Bp % cand == 0:
            tb = cand
            break
    else:
        for cand in range(cap, 7, -8):
            if Bp % cand == 0:
                tb = cand
                break
    return tb, tl, Bp, Lp


# --------------------------------------------------------------------------
# Wrapper
# --------------------------------------------------------------------------
def skipgram_loss(input_, target_, mask_):
    """Pallas implementation of SkipGram_loss.forward. Returns shape (B,) f32.

    Inputs are accepted in their native dtype (f32 logits; int8/bf16/f32 for
    the 0-1 target and mask); the upcast to f32 happens inside the kernel so
    narrow target/mask dtypes directly cut HBM traffic.
    """
    B, L = input_.shape
    itemsizes = [jnp.dtype(a.dtype).itemsize for a in (input_, target_, mask_)]
    TB, TL, Bp, Lp = _choose_tiles(B, L, max(itemsizes))

    x, t, m = input_, target_, mask_
    if (Bp, Lp) != (B, L):
        # Zero padding is exact: padded mask columns/rows contribute 0 to both
        # the numerator and the denominator; padded rows are sliced off below.
        pad = ((0, Bp - B), (0, Lp - L))
        x = jnp.pad(x, pad)
        t = jnp.pad(t, pad)
        m = jnp.pad(m, pad)

    nb, nk = Bp // TB, Lp // TL

    # Explicit VMEM limit: 2 pipeline buffers per input + accumulators, with
    # headroom; clamped so it stays under v7x's 64 MiB physical VMEM per TC.
    in_block_bytes = TB * TL * sum(itemsizes)
    vmem_needed = 2 * in_block_bytes + 2 * (TB * 128 * 4) + 2 * (TB * 4)
    vmem_limit = int(min(max(vmem_needed + (8 << 20), 16 << 20), 48 << 20))

    cost = pl.CostEstimate(
        flops=6 * Bp * Lp,
        transcendentals=2 * Bp * Lp,                      # exp + log1p
        bytes_accessed=Bp * Lp * sum(itemsizes) + Bp * 4,
    )

    out = pl.pallas_call(
        _skipgram_loss_kernel,
        out_shape=jax.ShapeDtypeStruct((Bp, 1), jnp.float32),
        grid_spec=pltpu.PrefetchScalarGridSpec(
            num_scalar_prefetch=0,
            grid=(nb, nk),
            in_specs=[
                pl.BlockSpec((TB, TL), lambda i, k: (i, k)),
                pl.BlockSpec((TB, TL), lambda i, k: (i, k)),
                pl.BlockSpec((TB, TL), lambda i, k: (i, k)),
            ],
            out_specs=pl.BlockSpec((TB, 1), lambda i, k: (i, 0)),
            scratch_shapes=[
                pltpu.VMEM((TB, 128), jnp.float32),   # lane-dense numerator
                pltpu.VMEM((TB, 128), jnp.float32),   # lane-dense denominator
            ],
        ),
        compiler_params=pltpu.CompilerParams(
            dimension_semantics=("parallel", "arbitrary"),
            vmem_limit_bytes=vmem_limit),
        cost_estimate=cost,
    )(x, t, m)
    return out[:B, 0]


# --------------------------------------------------------------------------
# Pure-JAX reference (mirrors the PyTorch module)
# --------------------------------------------------------------------------
def _reference(input_, target_, mask_):
    x = input_.astype(jnp.float32)
    t = target_.astype(jnp.float32)
    m = mask_.astype(jnp.float32)
    bce = jnp.maximum(x, 0.0) - x * t + jnp.log1p(jnp.exp(-jnp.abs(x)))
    res = (bce * m).mean(axis=1)
    return res * m.shape[1] / m.sum(axis=1)


if __name__ == "__main__":
    key = jax.random.PRNGKey(0)
    k1, k2, k3 = jax.random.split(key, 3)

    B, L = 16, 256  # small, (8,128)-aligned shapes
    logits = jax.random.normal(k1, (B, L), dtype=jnp.float32)
    # target / mask are {0,1}: ship them as int8 — 1 byte/element of HBM
    # traffic instead of 4; the lossless upcast happens in-kernel on the VPU.
    targets = jax.random.bernoulli(k2, 0.5, (B, L)).astype(jnp.int8)
    mask = jax.random.bernoulli(k3, 0.7, (B, L)).astype(jnp.int8)
    mask = mask.at[:, 0].set(1)  # guarantee each row has >= 1 nonzero

    out = skipgram_loss(logits, targets, mask)
    jax.block_until_ready(out)

    ref = _reference(logits, targets, mask)
    assert out.shape == (B,)
    assert jnp.allclose(out, ref, atol=1e-5, rtol=1e-5), (out, ref)
    print("KERNEL_OK")
</pallas_src>

<mosaic_0001>
module attributes {stable_mosaic.version = 11 : i64} {
  func.func @_skipgram_loss_kernel(%arg0: i32, %arg1: i32, %arg2: memref<8x256xf32, #tpu.memory_space<vmem>>, %arg3: memref<8x256xi8, #tpu.memory_space<vmem>>, %arg4: memref<8x256xi8, #tpu.memory_space<vmem>>, %arg5: memref<8x1xf32, #tpu.memory_space<vmem>>, %arg6: memref<8x128xf32, #tpu.memory_space<vmem>>, %arg7: memref<8x128xf32, #tpu.memory_space<vmem>>) attributes {dimension_semantics = [#tpu.dimension_semantics<parallel>, #tpu.dimension_semantics<arbitrary>], iteration_bounds = array<i64: 2, 1>, scalar_prefetch = 0 : i64, scratch_operands = 2 : i64, tpu.core_type = #tpu.core_type<tc>, window_params = [{transform_indices = @transform_0, window_bounds = array<i64: 8, 256>}, {transform_indices = @transform_1, window_bounds = array<i64: 8, 256>}, {transform_indices = @transform_2, window_bounds = array<i64: 8, 256>}, {transform_indices = @transform_3, window_bounds = array<i64: 8, 1>}]} {
    %c0_i32 = arith.constant 0 : i32
    %0 = arith.cmpi eq, %arg1, %c0_i32 : i32
    %1 = arith.extui %0 : i1 to i32
    %c0_i32_0 = arith.constant 0 : i32
    %2 = arith.cmpi ne, %1, %c0_i32_0 : i32
    scf.if %2 {
      %cst_17 = arith.constant 0.000000e+00 : f32
      %34 = vector.broadcast %cst_17 : f32 to vector<8x128xf32>
      %c0_18 = arith.constant 0 : index
      %c0_19 = arith.constant 0 : index
      %35 = vector.load %arg6[%c0_18, %c0_19] : memref<8x128xf32, #tpu.memory_space<vmem>>, vector<8x128xf32>
      tpu.vector_store %arg6[%c0_18, %c0_19], %34 {strides = array<i32>} : memref<8x128xf32, #tpu.memory_space<vmem>>, vector<8x128xf32>,
      %cst_20 = arith.constant 0.000000e+00 : f32
      %36 = vector.broadcast %cst_20 : f32 to vector<8x128xf32>
      %c0_21 = arith.constant 0 : index
      %c0_22 = arith.constant 0 : index
      %37 = vector.load %arg7[%c0_21, %c0_22] : memref<8x128xf32, #tpu.memory_space<vmem>>, vector<8x128xf32>
      tpu.vector_store %arg7[%c0_21, %c0_22], %36 {strides = array<i32>} : memref<8x128xf32, #tpu.memory_space<vmem>>, vector<8x128xf32>,
    } else {
    }
    %c0 = arith.constant 0 : index
    %c0_1 = arith.constant 0 : index
    %3 = vector.load %arg2[%c0, %c0_1] : memref<8x256xf32, #tpu.memory_space<vmem>>, vector<8x256xf32>
    %c0_2 = arith.constant 0 : index
    %c0_3 = arith.constant 0 : index
    %4 = vector.load %arg3[%c0_2, %c0_3] : memref<8x256xi8, #tpu.memory_space<vmem>>, vector<8x256xi8>
    %5 = arith.sitofp %4 : vector<8x256xi8> to vector<8x256xf32>
    %c0_4 = arith.constant 0 : index
    %c0_5 = arith.constant 0 : index
    %6 = vector.load %arg4[%c0_4, %c0_5] : memref<8x256xi8, #tpu.memory_space<vmem>>, vector<8x256xi8>
    %7 = arith.sitofp %6 : vector<8x256xi8> to vector<8x256xf32>
    %cst = arith.constant 0.000000e+00 : f32
    %8 = vector.broadcast %cst : f32 to vector<8x256xf32>
    %9 = arith.maximumf %3, %8 : vector<8x256xf32>
    %10 = arith.mulf %3, %5 : vector<8x256xf32>
    %11 = arith.subf %9, %10 : vector<8x256xf32>
    %12 = math.absf %3 : vector<8x256xf32>
    %cst_6 = arith.constant 0.000000e+00 : f32
    %13 = vector.broadcast %cst_6 : f32 to vector<8x256xf32>
    %14 = arith.subf %13, %12 : vector<8x256xf32>
    %15 = math.exp %14 : vector<8x256xf32>
    %16 = math.log1p %15 : vector<8x256xf32>
    %17 = arith.addf %11, %16 : vector<8x256xf32>
    %18 = arith.mulf %17, %7 : vector<8x256xf32>
    %19 = vector.extract_strided_slice %18 {offsets = [0, 0], sizes = [8, 128], strides = [1, 1]} : vector<8x256xf32> to vector<8x128xf32>
    %20 = vector.extract_strided_slice %7 {offsets = [0, 0], sizes = [8, 128], strides = [1, 1]} : vector<8x256xf32> to vector<8x128xf32>
    %21 = vector.extract_strided_slice %18 {offsets = [0, 128], sizes = [8, 128], strides = [1, 1]} : vector<8x256xf32> to vector<8x128xf32>
    %22 = arith.addf %19, %21 : vector<8x128xf32>
    %23 = vector.extract_strided_slice %7 {offsets = [0, 128], sizes = [8, 128], strides = [1, 1]} : vector<8x256xf32> to vector<8x128xf32>
    %24 = arith.addf %20, %23 : vector<8x128xf32>
    %c0_7 = arith.constant 0 : index
    %c0_8 = arith.constant 0 : index
    %25 = vector.load %arg6[%c0_7, %c0_8] : memref<8x128xf32, #tpu.memory_space<vmem>>, vector<8x128xf32>
    %26 = arith.addf %25, %22 : vector<8x128xf32>
    %c0_9 = arith.constant 0 : index
    %c0_10 = arith.constant 0 : index
    %27 = vector.load %arg6[%c0_9, %c0_10] : memref<8x128xf32, #tpu.memory_space<vmem>>, vector<8x128xf32>
    tpu.vector_store %arg6[%c0_9, %c0_10], %26 {strides = array<i32>} : memref<8x128xf32, #tpu.memory_space<vmem>>, vector<8x128xf32>,
    %c0_11 = arith.constant 0 : index
    %c0_12 = arith.constant 0 : index
    %28 = vector.load %arg7[%c0_11, %c0_12] : memref<8x128xf32, #tpu.memory_space<vmem>>, vector<8x128xf32>
    %29 = arith.addf %28, %24 : vector<8x128xf32>
    %c0_13 = arith.constant 0 : index
    %c0_14 = arith.constant 0 : index
    %30 = vector.load %arg7[%c0_13, %c0_14] : memref<8x128xf32, #tpu.memory_space<vmem>>, vector<8x128xf32>
    tpu.vector_store %arg7[%c0_13, %c0_14], %29 {strides = array<i32>} : memref<8x128xf32, #tpu.memory_space<vmem>>, vector<8x128xf32>,
    %c0_i32_15 = arith.constant 0 : i32
    %31 = arith.cmpi eq, %arg1, %c0_i32_15 : i32
    %32 = arith.extui %31 : i1 to i32
    %c0_i32_16 = arith.constant 0 : i32
    %33 = arith.cmpi ne, %32, %c0_i32_16 : i32
    scf.if %33 {
      %c0_17 = arith.constant 0 : index
      %c0_18 = arith.constant 0 : index
      %34 = vector.load %arg6[%c0_17, %c0_18] : memref<8x128xf32, #tpu.memory_space<vmem>>, vector<8x128xf32>
      %cst_19 = arith.constant dense<0.000000e+00> : vector<8xf32>
      %35 = vector.multi_reduction <add>, %34, %cst_19 [1] : vector<8x128xf32> to vector<8xf32>
      %36 = vector.shape_cast %35 : vector<8xf32> to vector<8x1xf32>
      %c0_20 = arith.constant 0 : index
      %c0_21 = arith.constant 0 : index
      %37 = vector.load %arg7[%c0_20, %c0_21] : memref<8x128xf32, #tpu.memory_space<vmem>>, vector<8x128xf32>
      %cst_22 = arith.constant dense<0.000000e+00> : vector<8xf32>
      %38 = vector.multi_reduction <add>, %37, %cst_22 [1] : vector<8x128xf32> to vector<8xf32>
      %39 = vector.shape_cast %38 : vector<8xf32> to vector<8x1xf32>
      %40 = arith.divf %36, %39 : vector<8x1xf32>
      %c0_23 = arith.constant 0 : index
      %c0_24 = arith.constant 0 : index
      %41 = vector.load %arg5[%c0_23, %c0_24] : memref<8x1xf32, #tpu.memory_space<vmem>>, vector<8x1xf32>
      tpu.vector_store %arg5[%c0_23, %c0_24], %40 {strides = array<i32>} : memref<8x1xf32, #tpu.memory_space<vmem>>, vector<8x1xf32>,
    } else {
    }
    return
  }
  func.func @transform_0(%arg0: i32, %arg1: i32) -> (i32, i32) {
    %c0_i32 = arith.constant 0 : i32
    return %arg0, %arg1 : i32, i32
  }
  func.func @transform_1(%arg0: i32, %arg1: i32) -> (i32, i32) {
    %c0_i32 = arith.constant 0 : i32
    return %arg0, %arg1 : i32, i32
  }
  func.func @transform_2(%arg0: i32, %arg1: i32) -> (i32, i32) {
    %c0_i32 = arith.constant 0 : i32
    return %arg0, %arg1 : i32, i32
  }
  func.func @transform_3(%arg0: i32, %arg1: i32) -> (i32, i32) {
    %c0_i32 = arith.constant 0 : i32
    %c0_i32_0 = arith.constant 0 : i32
    return %arg0, %c0_i32 : i32, i32
  }
}

</mosaic_0001>

<bundles_post_ra>
// kernel: tpu_custom_call.1
= control target key start
LH: loop header
LB: loop body
LE: loop exit
PB: predicated region body
PF: predicated region fallthrough
CT: control target
= control target key end

     0   :  { %s889_s0 = inlined_call_operand.hbm [shape: f32[16,256], index: 0, kind: input, shape index: {}]   ;;  %s890_s1 = inlined_call_operand.hbm [shape: s8[16,256], index: 1, kind: input, shape index: {}]   ;;  %s891_s2 = inlined_call_operand.hbm [shape: s8[16,256], index: 2, kind: input, shape index: {}]   ;;  %s892_s3 = inlined_call_operand.vmem [shape: f32[16,1], index: 3, kind: output, shape index: {}]  }
   0x1   :  { %894 = sst [smem:[#allocation11_spill]] %s890_s1 }
   0x2   :  { %8 = vsyncpa [#allocation5], 0 }
   0x3   :  { %10 = vsyncpa [#allocation5 + $0x1], 0 }
   0x4   :  { %11 = vsyncpa [#allocation7], 0 }
   0x5   :  { %13 = vsyncpa [#allocation7 + $0x1], 0  ;;  %s748_s12 = smov 0   ;;  %s750_s13 = smov 0  }
   0x6   :  { %s752_s14 = smov 0   ;;  %s754_s15 = smov 0  }
   0x7   :  { %s756_s16 = smov 0   ;;  %s758_s17 = smov 0  }
   0x8 LB: > { %s893_s18 = sadd.s32 4294967295, %s723_s17   ;;  %s31_s19 = sadd.s32 1, %s719_s16  ;;  %s723_s17 = sphi %s758_s17, %s19_s17   ;;  %s719_s16 = sphi %s756_s16, %s904_s16   ;;  %s715_s15 = sphi %s754_s15, %s903_s15   ;;  %s711_s14 = sphi %s752_s14, %s902_s14   ;;  %s707_s13 = sphi %s750_s13, %s901_s13   ;;  %s703_s12 = sphi %s748_s12, %s900_s12  }
   0x9   : > { %p33_p0 = scmp.ge.s32.totalorder %s31_s19, 2  ;;  %s40_s20 = sadd.s32 1, %s711_s14 }
   0xa   : > { %p47_p1 = scmp.ne.s32.totalorder %s711_s14, %s707_s13  ;;  %p48_p2 = scmp.eq.s32.totalorder %s723_s17, 0 }
   0xb   : > { %s906_s19 = smov (%p33_p0, %s31_s19), 0  ;;  %p53_p4 = scmp.ne.s32.totalorder %s707_s13, %s703_s12 }
   0xc   : > { %p49_p3 = por %p48_p2, %p47_p1  ;;  %s35_s21 = ssub.s32 %s719_s16, %s906_s19 }
   0xd   : > { %p54_p5 = scmp.eq.s32.totalorder %s893_s18, 0  ;;  %p38_p6 = scmp.eq.s32.totalorder %s35_s21, 0 }
   0xe   : > { %p526_p8 = scmp.lt.s32.totalorder %s723_s17, 2  ;;  %s798_s24 = sand.u32 1, %s711_s14  }
   0xf   : > { %p789_p7 = por %p54_p5, %p53_p4  ;;  %s180_s26 = sand.u32 1, %s723_s17  }
  0x10   : > { %s795_s23 = scalar_select %p38_p6, %s711_s14, %s40_s20  }
  0x11   : > { %p800_p9 = pnand %p526_p8, %p49_p3  ;;  %s494_s27 = sshll.u32 %s798_s24, 2 }
  0x12   : > { %s508_s28 = sshll.u32 %s719_s16, 6  ;;  %s897_s1 = sld [smem:[#allocation11_spill]] }
  0x13   : > { %s184_s5 = scalar_lea.vmem [#allocation6], %s494_s27  ;;  %s812_s7 = scalar_lea.sflag [#allocation7], %s180_s26 }
  0x14   : > { %s194_s6 = sshll.u32 %s184_s5, 4  ;;  %p587_p10 = pneg %p800_p9  ;;  %s195_s6 = int_to_ptr.vmem [resolvable:$true] %s194_s6 }
  0x15   : > { %s598_s8 = scalar_lea.vmem %s195_s6, 64  ;;  %s725_s9 = smov [#allocation6]  }
  0x16   : > { %p599_p11 = scmp.ne.s32.totalorder %s195_s6, %s598_s8  ;;  %s603_s10 = sshll.u32 %s725_s9, 4  ;;  %s604_s10 = int_to_ptr.vmem [resolvable:$false] %s603_s10 }
  0x17   : > { %s605_s11 = scalar_lea.vmem %s604_s10, 128  ;;  %p606_p0 = scmp.lt.s32.totalorder %s195_s6, %s604_s10 }
  0x18   : > { %s192_s4 = scalar_lea.hbm %s897_s1, %s508_s28  ;;  %p601_p12 = pnand %p599_p11, %p587_p10 }
  0x19   : > { %p607_p1 = scmp.lt.s32.totalorder %s605_s11, %s598_s8 }
  0x1a   : > { %p602_p13 = pneg %p601_p12 }
  0x1b   : > { %p608_p2 = por %p607_p1, %p606_p0 }
  0x1d   : > { %p609_p3 = pnand %p608_p2, %p602_p13 }
  0x1f   : > { %612 = shalt.err (!%p609_p3)
}
  0x20   : > { %522 = dma.hbm_to_vmem [thread:$0]  (!%p800_p9), %s192_s4, 64, %s195_s6, %s812_s7  }
  0x21   : > { %s825_s21 = scalar_lea.hbm %s891_s2, %s508_s28  ;;  %p500_p4 = scmp.ge.s32.totalorder %s723_s17, 1 }
  0x22   : > { %p220_p5 = scmp.lt.s32.totalorder %s723_s17, 3  ;;  %s491_s29 = sshll.u32 %s798_s24, 4 }
  0x23   : > { %s507_s30 = sshll.u32 %s719_s16, 8  ;;  %s163_s10 = scalar_lea.vmem [#allocation4], %s491_s29 }
  0x24   : > { %p829_p6 = pnand %p500_p4, %p220_p5  ;;  %s171_s9 = scalar_lea.hbm %s889_s0, %s507_s30 }
  0x25   : > { %s173_s4 = sshll.u32 %s163_s10, 4  ;;  %s205_s6 = scalar_lea.vmem [#allocation8], %s494_s27  ;;  %s174_s4 = int_to_ptr.vmem [resolvable:$true] %s173_s4 }
  0x26   : > { %s215_s11 = sshll.u32 %s205_s6, 4  ;;  %s160_s28 = scalar_lea.sflag [#allocation5], %s798_s24  ;;  %s216_s11 = int_to_ptr.vmem [resolvable:$true] %s215_s11 }
  0x27   : > { %s626_s12 = scalar_lea.vmem %s174_s4, 256  ;;  %s726_s20 = smov [#allocation4]  }
  0x28   : > { %p627_p8 = scmp.ne.s32.totalorder %s174_s4, %s626_s12  ;;  %s631_s18 = sshll.u32 %s726_s20, 4  ;;  %s632_s18 = int_to_ptr.vmem [resolvable:$false] %s631_s18 }
  0x29   : > { %s633_s1 = scalar_lea.vmem %s632_s18, 512  ;;  %p634_p13 = scmp.lt.s32.totalorder %s174_s4, %s632_s18 }
  0x2a   : > { %p629_p11 = pnand %p627_p8, %p587_p10  ;;  %p635_p0 = scmp.lt.s32.totalorder %s633_s1, %s626_s12 }
  0x2c   : > { %p630_p12 = pneg %p629_p11  ;;  %p636_p1 = por %p635_p0, %p634_p13 }
  0x2e   : > { %p637_p2 = pnand %p636_p1, %p630_p12 }
  0x30   : > { %640 = shalt.err (!%p637_p2)
}
  0x31   : > { %519 = dma.hbm_to_vmem [thread:$0]  (!%p800_p9), %s171_s9, 256, %s174_s4, %s160_s28  }
  0x32   : > { %s654_s24 = scalar_lea.vmem %s216_s11, 64  ;;  %s727_s27 = smov [#allocation8]  }
  0x33   : > { %p655_p3 = scmp.ne.s32.totalorder %s216_s11, %s654_s24  ;;  %s659_s29 = sshll.u32 %s727_s27, 4  ;;  %s660_s29 = int_to_ptr.vmem [resolvable:$false] %s659_s29 }
  0x34   : > { %s661_s30 = scalar_lea.vmem %s660_s29, 128  ;;  %p662_p8 = scmp.lt.s32.totalorder %s216_s11, %s660_s29 }
  0x35   : > { %p657_p4 = pnand %p655_p3, %p587_p10  ;;  %p663_p11 = scmp.lt.s32.totalorder %s661_s30, %s654_s24 }
  0x37   : > { %p658_p5 = pneg %p657_p4  ;;  %p664_p13 = por %p663_p11, %p662_p8 }
  0x39   : > { %p665_p12 = pnand %p664_p13, %p658_p5 }
  0x3b   : > { %668 = shalt.err (!%p665_p12)
}
  0x3c   : > { %525 = dma.hbm_to_vmem [thread:$0]  (!%p800_p9), %s825_s21, 64, %s216_s11, %s812_s7  }
  0x3d   : > { %224 = sbr.rel (%p829_p6) target bundleno = 259 (0x103), region = 32  ;;  %s226_s1 = sand.u32 (!%p829_p6), 1, %s707_s13  }
  0x3e   : > { %s501_s18 = sshll.u32 (!%p829_p6), %s226_s1, 4  ;;  %s227_s5 = scalar_lea.sflag (!%p829_p6), [#allocation5], %s226_s1 }
  0x3f   : > { %s230_s8 = scalar_lea.vmem (!%p829_p6), [#allocation4], %s501_s18 }
  0x42   : > { %694 = dma.done.wait (%p789_p7), %s227_s5, 256  }
  0x43   : > { %696 = vsyncadd (%p789_p7), %s227_s5, 4294967040  ;;  %s899_s9 = sadd.s32 4294967295, %s723_s17   ;;  %s502_s10 = sshll.u32 %s226_s1, 2 }
  0x44   : > { %s235_s25 = sand.u32 1, %s899_s9   ;;  %s239_s21 = scalar_lea.vmem [#allocation6], %s502_s10 }
  0x45   : > { %s236_s7 = scalar_lea.sflag [#allocation7], %s235_s25 }
  0x46   : > { %698 = dma.done.wait (%p789_p7), %s236_s7, 128  }
  0x47   : > { %700 = vsyncadd (%p789_p7), %s236_s7, 4294967168  ;;  %s248_s26 = scalar_lea.vmem [#allocation8], %s502_s10  ;;  %v293_v1 = vld [vmem:[%s230_s8] sm:$0xff]  ;;  %v294_v2 = vld [vmem:[%s230_s8 + $0x8] sm:$0xff]  ;;  %p283_p7 = scmp.lt.s32.totalorder %s715_s15, 1  ;;  %vm360_vm2 = vcmask 7168  }
  0x48   : > { %v300_v0 = vld [vmem:[%s248_s26] sm:$0xf]  ;;  %v311_v5 = vand.u32 2147483647, %v293_v1  ;;  %v312_v6 = vand.u32 2147483647, %v294_v2 }
  0x49   : > { %v301_v3 = vunpack.c.0.s8 %v300_v0  ;;  %v302_v4 = vunpack.c.1.s8 %v300_v0  ;;  %v295_v16 = vld [vmem:[%s239_s21] sm:$0xf]  ;;  %v305_v26 = vmax.f32 %v293_v1, 0.0  ;;  %v306_v30 = vmax.f32 %v294_v2, 0.0  ;;  %s908_s15 = smov (!%p283_p7, %s715_s15), 1 }
  0x4a   : > { %v313_v9 = vsub.f32 0.0, %v311_v5  ;;  %v314_v10 = vsub.f32 0.0, %v312_v6  ;;  %v296_v19 = vunpack.c.0.s8 %v295_v16  ;;  %v297_v20 = vunpack.c.1.s8 %v295_v16  ;;  %s504_s22 = sshll.u32 %s908_s15, 3 }
  0x4b   : > { %v303_v7 = vcvt.s32.f32 %v301_v3  ;;  %v304_v8 = vcvt.s32.f32 %v302_v4  ;;  %s286_s11 = scalar_lea.vmem %s892_s3, %s504_s22 }
  0x4c   : > { %v315_v12 = vmul.f32 1.442695, %v313_v9  ;;  %v317_v13 = vmul.f32 1.442695, %v314_v10  ;;  %v298_v22 = vcvt.s32.f32 %v296_v19  ;;  %v299_v24 = vcvt.s32.f32 %v297_v20 }
  0x4d   : > { %v342_v11 = vadd.f32 %v304_v8, %v303_v7 }
  0x4e   : > { %575 = vpow2.f32 %v315_v12  ;;  %v307_v27 = vmul.f32 %v298_v22, %v293_v1  ;;  %v308_v31 = vmul.f32 %v299_v24, %v294_v2 }
  0x4f   : > { %356 = vadd.xlane.f32.xlu0 %v342_v11  ;;  %577 = vpow2.f32 %v317_v13 }
  0x50   : > { %v309_v35 = vsub.f32 %v305_v26, %v307_v27  ;;  %v310_v38 = vsub.f32 %v306_v30, %v308_v31 }
  0x5b   : > { %v576_v14 = vpop.eup %575 }
  0x5c   : > { %v578_v15 = vpop.eup %577  ;;  %v319_v17 = vadd.f32 1.0, %v576_v14  ;;  %v322_v21 = vmul.f32 -0.5, %v576_v14  ;;  %v325_v28 = vand.u32 2147483647, %v576_v14 }
  0x5d   : > { %v328_v18 = vadd.f32 1.0, %v578_v15  ;;  %v331_v23 = vmul.f32 -0.5, %v578_v15  ;;  %v334_v32 = vand.u32 2147483647, %v578_v15 }
  0x5e   : > { %579 = vlog2.f32 %v319_v17  ;;  %v323_v25 = vadd.f32 1.0, %v322_v21  ;;  %vm326_vm0 = vcmp.lt.f32.partialorder %v325_v28, 0.0004427343 }
  0x5f   : > { %581 = vlog2.f32 %v328_v18  ;;  %v332_v29 = vadd.f32 1.0, %v331_v23  ;;  %vm335_vm1 = vcmp.lt.f32.partialorder %v334_v32, 0.0004427343 }
  0x60   : > { %v324_v33 = vmul.f32 %v576_v14, %v323_v25 }
  0x61   : > { %v333_v36 = vmul.f32 %v578_v15, %v332_v29 }
  0x6b   : > { %v580_v34 = vpop.eup %579 }
  0x6c   : > { %v582_v37 = vpop.eup %581  ;;  %v321_v39 = vmul.f32 0.6931472, %v580_v34 }
  0x6d   : > { %v330_v40 = vmul.f32 0.6931472, %v582_v37 }
  0x6e   : > { %v327_v41 = vsel %vm326_vm0, %v324_v33, %v321_v39 }
  0x6f   : > { %v336_v42 = vsel %vm335_vm1, %v333_v36, %v330_v40  ;;  %v337_v43 = vadd.f32 %v327_v41, %v309_v35 }
  0x70   : > { %v338_v44 = vadd.f32 %v336_v42, %v310_v38 }
  0x71   : > { %v339_v45 = vmul.f32 %v337_v43, %v303_v7 }
  0x72   : > { %v340_v46 = vmul.f32 %v338_v44, %v304_v8 }
  0x74   : > { %v341_v47 = vadd.f32 %v340_v46, %v339_v45 }
  0x76   : > { %353 = vadd.xlane.f32.xlu0 %v341_v47 }
  0xd8   : > { %v357_v48 = vpop.xlane.xlu0 %356 }
  0xd9   : > { %583 = vrcp.f32 %v357_v48 }
  0xe6   : > { %v584_v49 = vpop.eup %583 }
  0xff   : > { %v354_v50 = vpop.xlane.xlu0 %353 }
 0x100   : > { %v359_v51 = vmul.f32 %v584_v49, %v354_v50 }
 0x102   : > { %361 = vst.msk [vmem:[%s286_s11] sm:$0xff] %vm360_vm2, %v359_v51 }
 0x103 PF: > { %s19_s17 = sadd.s32 1, %s723_s17   ;;  %s900_s12 = smov %s707_s13 }
 0x104   : > { %p16_p9 = scmp.ge.s32.totalorder %s19_s17, 4   ;;  %s901_s13 = smov %s711_s14 }
 0x105   : > { %s902_s14 = smov %s795_s23  ;;  %s903_s15 = smov %s719_s16 }
 0x106   : > { %s904_s16 = smov %s906_s19  ;;  %18 = sbr.rel (!%p16_p9) target bundleno = 8 (0x8), region = 104 }
 0x10b   :  { %381 = vsyncpa [#allocation5], 1 }
 0x10c   :  { %383 = vsyncpa [#allocation5 + $0x1], 1 }
 0x10d   :  { %384 = vsyncpa [#allocation7], 1 }
 0x10e   :  { %386 = vsyncpa [#allocation7 + $0x1], 1 }

</bundles_post_ra>
